<compile_context>
chip_gen: v7x
topology: tpu7x:2x2x1
jax: 0.10.0
libtpu: 0.0.40
codegen_flags: <defaults>
</compile_context>

<pallas_src>
import jax
import jax.numpy as jnp
import numpy as np
from jax.experimental import pallas as pl
from jax.experimental.pallas import tpu as pltpu


def deepfm_kernel(idx_ref, rep_ref, gpos_ref, tab_ref, b1_ref, w2_ref, b2_ref,
                  w3_ref, bias_ref, out_ref):
    """One batch tile.  All activations are (feature, batch-on-lanes) oriented.

      idx_ref  (F, TB)   int32  global (offset) indices, batch on lanes (streamed)
      rep_ref  (Vp, F)   f32    rep[v, f] = 1 iff vocab row v belongs to field f
      gpos_ref (Vp, 1)   f32    vocab-row id (v) for valid rows, -1 for pad rows
      tab_ref  (M, Vp)   bf16   rows = [fm_emb.T | (fm_emb**2).T | deep-fold.T | lin_w.T]
      b1_ref   (H1, 1)   f32
      w2_ref   (H2, H1)  f32    = w2.T
      b2_ref   (H2, 1)   f32
      w3_ref   (H2, 1)   f32
      bias_ref (1, 1)    f32    SMEM scalar: lin_bias + b3
      out_ref  (1, TB)   f32    sigmoid(logits), lane-dense store
    """
    M = tab_ref.shape[0]
    H1 = b1_ref.shape[0]
    D = (M - 1 - H1) // 2

    # Broadcast each example's per-field global index to its field's vocab rows:
    #   gmat[v, b] = global_index[field(v), b]     (exact: one nonzero term per row)
    xf = idx_ref[...].astype(jnp.float32)                                   # (F, TB)
    gmat = jnp.dot(rep_ref[...], xf, preferred_element_type=jnp.float32)    # (Vp, TB)

    # Multi-hot over the vocabulary (fields partition it -> exactly F ones/column).
    # Pad rows have gpos = -1 and an all-zero rep row, so they never match.
    oh = (gmat == gpos_ref[...]).astype(jnp.bfloat16)                       # (Vp, TB)

    # One fused gather + field-sum matmul on the MXU (bf16 in, f32 accumulate).
    g = jnp.dot(tab_ref[...], oh, preferred_element_type=jnp.float32)       # (M, TB)

    sum_e = g[0:D, :]                          # sum_f fm_emb[g_f]          (D, TB)
    sum_sq = g[D:2 * D, :]                     # sum_f fm_emb[g_f]**2       (D, TB)
    h1_pre = g[2 * D:2 * D + H1, :]            # deep layer-1 pre-act       (H1, TB)
    first = g[2 * D + H1:2 * D + H1 + 1, :]    # sum_f lin_w[g_f]           (1, TB)

    # FM second-order term (only over the D embedding rows).
    second = 0.5 * jnp.sum(sum_e * sum_e - sum_sq, axis=0, keepdims=True)   # (1, TB)

    # Deep MLP (first Linear already folded into the gather table).
    h1 = jnp.maximum(h1_pre + b1_ref[...], 0.0)                             # (H1, TB)
    h2 = jnp.dot(w2_ref[...], h1, preferred_element_type=jnp.float32) + b2_ref[...]
    h2 = jnp.maximum(h2, 0.0)                                               # (H2, TB)
    # Final 1-row projection as VPU multiply + sublane reduction (no M=1 MXU pass).
    mlp = jnp.sum(w3_ref[...] * h2, axis=0, keepdims=True)                  # (1, TB)

    logits = first + second + mlp + bias_ref[0, 0]
    # numerically stable sigmoid
    z = jnp.exp(-jnp.abs(logits))
    out_ref[...] = jnp.where(logits >= 0.0, 1.0 / (1.0 + z), z / (1.0 + z))


def deepfm_forward(x_idx, params, field_dims, *, batch_tile=2048):
    """x_idx: (B, F) int32 raw per-field indices.  Returns (B, 1) probabilities."""
    field_dims = [int(d) for d in field_dims]
    F = len(field_dims)
    V = int(sum(field_dims))
    D = int(params["fm_emb"].shape[1])
    H1 = int(params["w1"].shape[1])
    H2 = int(params["w2"].shape[1])
    M = 2 * D + H1 + 1
    Vp = ((V + 7) // 8) * 8                      # sublane-pad the vocab axis

    offsets_np = np.array((0, *np.cumsum(field_dims)[:-1]), dtype=np.int32)
    idx = x_idx.astype(jnp.int32) + jnp.asarray(offsets_np)[None, :]   # (B, F) global
    B = int(idx.shape[0])

    # ---- host-side table prep (tiny; stays VMEM-resident inside the kernel) ----
    field_of = np.repeat(np.arange(F, dtype=np.int32), field_dims)     # (V,)
    fm = params["fm_emb"]                                              # (V, D)
    w1_r = params["w1"].reshape(F, D, H1)
    # fold the deep tower's first Linear into a per-vocab-row table:
    #   dfold[:, v] = (deep_emb[v] @ w1[field(v)*D : (field(v)+1)*D, :]).T
    dfold = jnp.einsum("vd,vdh->hv", params["deep_emb"], w1_r[field_of])   # (H1, V)

    tab = jnp.concatenate([fm.T, (fm * fm).T, dfold, params["lin_w"].T], axis=0)  # (M, V)
    tab = jnp.pad(tab, ((0, 0), (0, Vp - V))).astype(jnp.bfloat16)     # (M, Vp) bf16

    rep_np = np.zeros((Vp, F), np.float32)
    rep_np[np.arange(V), field_of] = 1.0
    gpos_np = np.full((Vp, 1), -1.0, np.float32)
    gpos_np[:V, 0] = np.arange(V, dtype=np.float32)
    rep = jnp.asarray(rep_np)                                          # (Vp, F)
    gpos = jnp.asarray(gpos_np)                                        # (Vp, 1)

    b1_c = params["b1"].reshape(H1, 1).astype(jnp.float32)
    w2_t = params["w2"].T.astype(jnp.float32)                          # (H2, H1)
    b2_c = params["b2"].reshape(H2, 1).astype(jnp.float32)
    w3_c = params["w3"].reshape(H2, 1).astype(jnp.float32)             # (H2, 1)
    bias_sum = (params["lin_bias"].reshape(-1)[0]
                + params["b3"].reshape(-1)[0]).reshape(1, 1).astype(jnp.float32)

    # ---- batch tiling: lane-dense TB (multiple of 128); aim for >=2 grid steps
    # when B allows so the "parallel" axis feeds both v7x TensorCores. ----
    TB = min(int(batch_tile), max(128, ((((B + 1) // 2) + 127) // 128) * 128))
    TB = max(128, (TB // 128) * 128)
    n_tiles = (B + TB - 1) // TB
    B_pad = n_tiles * TB
    # pad the tail tile with index 0 (valid rows); padded outputs are sliced away
    idx_t = jnp.pad(idx, ((0, B_pad - B), (0, 0))).T                   # (F, B_pad)

    out_t = pl.pallas_call(
        deepfm_kernel,
        out_shape=jax.ShapeDtypeStruct((1, B_pad), jnp.float32),
        grid=(n_tiles,),
        in_specs=[
            pl.BlockSpec((F, TB), lambda i: (0, i)),        # indices (streamed)
            pl.BlockSpec((Vp, F), lambda i: (0, 0)),        # replicate matrix (resident)
            pl.BlockSpec((Vp, 1), lambda i: (0, 0)),        # vocab-row ids (resident)
            pl.BlockSpec((M, Vp), lambda i: (0, 0)),        # fused gather table (resident)
            pl.BlockSpec((H1, 1), lambda i: (0, 0)),        # b1
            pl.BlockSpec((H2, H1), lambda i: (0, 0)),       # w2.T
            pl.BlockSpec((H2, 1), lambda i: (0, 0)),        # b2
            pl.BlockSpec((H2, 1), lambda i: (0, 0)),        # w3
            pl.BlockSpec((1, 1), lambda i: (0, 0),
                         memory_space=pltpu.MemorySpace.SMEM),   # lin_bias + b3 scalar
        ],
        out_specs=pl.BlockSpec((1, TB), lambda i: (0, i)),  # lane-dense output store
        compiler_params=pltpu.CompilerParams(
            dimension_semantics=("parallel",),              # megacore-friendly
            vmem_limit_bytes=32 * 1024 * 1024),
    )(idx_t, rep, gpos, tab, b1_c, w2_t, b2_c, w3_c, bias_sum)

    return out_t[0, :B].reshape(B, 1)


def deepfm_reference(x_idx, params, field_dims):
    """Pure-JAX f32 reference matching the PyTorch module (correctness check)."""
    offsets = jnp.asarray(np.array((0, *np.cumsum(list(field_dims))[:-1]), dtype=np.int32))
    idx = x_idx.astype(jnp.int32) + offsets[None, :]
    lin = jnp.take(params["lin_w"], idx, axis=0)[..., 0]         # (B, F)
    fm_e = jnp.take(params["fm_emb"], idx, axis=0)               # (B, F, D)
    deep_e = jnp.take(params["deep_emb"], idx, axis=0)           # (B, F, D)
    first = jnp.sum(lin, axis=1, keepdims=True) + params["lin_bias"][0]
    sum_e = jnp.sum(fm_e, axis=1)
    sum_sq = jnp.sum(fm_e * fm_e, axis=1)
    second = 0.5 * jnp.sum(sum_e * sum_e - sum_sq, axis=1, keepdims=True)
    B = idx.shape[0]
    deep = deep_e.reshape(B, -1)
    h = jax.nn.relu(deep @ params["w1"] + params["b1"])
    h = jax.nn.relu(h @ params["w2"] + params["b2"])
    mlp = h @ params["w3"] + params["b3"]
    return jax.nn.sigmoid(first + second + mlp)


def init_params(key, field_dims, embed_dim, mlp_dims):
    total = int(sum(field_dims))
    F = len(field_dims)
    in_dim = F * embed_dim
    k = jax.random.split(key, 9)

    def xavier(k_, shape):
        fan_in, fan_out = shape[0], shape[1]
        lim = float(np.sqrt(6.0 / (fan_in + fan_out)))
        return jax.random.uniform(k_, shape, jnp.float32, -lim, lim)

    def linear_init(kw, kb, fan_in, fan_out):
        lim = float(1.0 / np.sqrt(fan_in))
        w = jax.random.uniform(kw, (fan_in, fan_out), jnp.float32, -lim, lim)
        b = jax.random.uniform(kb, (1, fan_out), jnp.float32, -lim, lim)
        return w, b

    h1, h2 = mlp_dims
    w1, b1 = linear_init(k[3], k[4], in_dim, h1)
    w2, b2 = linear_init(k[5], k[6], h1, h2)
    w3, b3 = linear_init(k[7], k[8], h2, 1)

    return {
        "fm_emb": xavier(k[0], (total, embed_dim)),
        "deep_emb": xavier(k[1], (total, embed_dim)),
        "lin_w": xavier(k[2], (total, 1)),
        "lin_bias": jnp.zeros((1,), jnp.float32),
        "w1": w1, "b1": b1,
        "w2": w2, "b2": b2,
        "w3": w3, "b3": b3,
    }


if __name__ == "__main__":
    field_dims = [10, 20, 30, 40, 10, 20, 30, 40]   # 8 fields, vocab = 200
    embed_dim = 16
    mlp_dims = [32, 32]
    B = 2

    key = jax.random.PRNGKey(0)
    kparams, kx = jax.random.split(key)
    params = init_params(kparams, field_dims, embed_dim, mlp_dims)

    # deterministic integer inputs, each field index < its field_dim
    maxes = jnp.asarray(field_dims, dtype=jnp.int32)
    x = jax.random.randint(kx, (B, len(field_dims)), 0, 1_000_000, dtype=jnp.int32) % maxes

    out = jax.block_until_ready(deepfm_forward(x, params, field_dims))
    ref = jax.block_until_ready(deepfm_reference(x, params, field_dims))

    assert out.shape == (B, 1)
    assert bool(jnp.all((out >= 0.0) & (out <= 1.0)))
    assert bool(jnp.allclose(out, ref, rtol=3e-3, atol=3e-3)), (out, ref)
    print("KERNEL_OK")
</pallas_src>

<mosaic_0001>
module attributes {stable_mosaic.version = 11 : i64} {
  func.func @deepfm_kernel(%arg0: i32, %arg1: memref<8x128xi32, #tpu.memory_space<vmem>>, %arg2: memref<200x8xf32, #tpu.memory_space<vmem>>, %arg3: memref<200x1xf32, #tpu.memory_space<vmem>>, %arg4: memref<65x200xbf16, #tpu.memory_space<vmem>>, %arg5: memref<32x1xf32, #tpu.memory_space<vmem>>, %arg6: memref<32x32xf32, #tpu.memory_space<vmem>>, %arg7: memref<32x1xf32, #tpu.memory_space<vmem>>, %arg8: memref<32x1xf32, #tpu.memory_space<vmem>>, %arg9: memref<1x1xf32, #tpu.memory_space<smem>>, %arg10: memref<1x128xf32, #tpu.memory_space<vmem>>) attributes {dimension_semantics = [#tpu.dimension_semantics<parallel>], iteration_bounds = array<i64: 1>, scalar_prefetch = 0 : i64, scratch_operands = 0 : i64, tpu.core_type = #tpu.core_type<tc>, window_params = [{transform_indices = @transform_0, window_bounds = array<i64: 8, 128>}, {pipeline_mode = #tpu.pipeline_mode<synchronous>, transform_indices = @transform_1, window_bounds = array<i64: 200, 8>}, {pipeline_mode = #tpu.pipeline_mode<synchronous>, transform_indices = @transform_2, window_bounds = array<i64: 200, 1>}, {pipeline_mode = #tpu.pipeline_mode<synchronous>, transform_indices = @transform_3, window_bounds = array<i64: 65, 200>}, {pipeline_mode = #tpu.pipeline_mode<synchronous>, transform_indices = @transform_4, window_bounds = array<i64: 32, 1>}, {pipeline_mode = #tpu.pipeline_mode<synchronous>, transform_indices = @transform_5, window_bounds = array<i64: 32, 32>}, {pipeline_mode = #tpu.pipeline_mode<synchronous>, transform_indices = @transform_6, window_bounds = array<i64: 32, 1>}, {pipeline_mode = #tpu.pipeline_mode<synchronous>, transform_indices = @transform_7, window_bounds = array<i64: 32, 1>}, {transform_indices = @transform_8, window_bounds = array<i64: 1, 1>}, {transform_indices = @transform_9, window_bounds = array<i64: 1, 128>}]} {
    %c0 = arith.constant 0 : index
    %c0_0 = arith.constant 0 : index
    %0 = vector.load %arg1[%c0, %c0_0] : memref<8x128xi32, #tpu.memory_space<vmem>>, vector<8x128xi32>
    %1 = arith.sitofp %0 : vector<8x128xi32> to vector<8x128xf32>
    %c0_1 = arith.constant 0 : index
    %c0_2 = arith.constant 0 : index
    %2 = vector.load %arg2[%c0_1, %c0_2] : memref<200x8xf32, #tpu.memory_space<vmem>>, vector<200x8xf32>
    %cst = arith.constant dense<0.000000e+00> : vector<200x128xf32>
    %3 = tpu.matmul %2, %1, %cst {dimension_numbers = #tpu.dot_dimension_numbers<[1], [0], [0], [1], [0, 0, 1, 1], [], []>} : vector<200x8xf32>, vector<8x128xf32>, vector<200x128xf32> -> vector<200x128xf32>
    %c0_3 = arith.constant 0 : index
    %c0_4 = arith.constant 0 : index
    %4 = vector.load %arg3[%c0_3, %c0_4] : memref<200x1xf32, #tpu.memory_space<vmem>>, vector<200x1xf32>
    %5 = vector.broadcast %4 : vector<200x1xf32> to vector<200x128xf32>
    %6 = arith.cmpf oeq, %3, %5 : vector<200x128xf32>
    %7 = arith.extui %6 : vector<200x128xi1> to vector<200x128xi32>
    %8 = arith.sitofp %7 : vector<200x128xi32> to vector<200x128xf32>
    %9 = arith.truncf %8 : vector<200x128xf32> to vector<200x128xbf16>
    %c0_5 = arith.constant 0 : index
    %c0_6 = arith.constant 0 : index
    %10 = vector.load %arg4[%c0_5, %c0_6] : memref<65x200xbf16, #tpu.memory_space<vmem>>, vector<65x200xbf16>
    %cst_7 = arith.constant dense<0.000000e+00> : vector<65x128xf32>
    %11 = tpu.matmul %10, %9, %cst_7 {dimension_numbers = #tpu.dot_dimension_numbers<[1], [0], [0], [1], [0, 0, 1, 1], [], []>} : vector<65x200xbf16>, vector<200x128xbf16>, vector<65x128xf32> -> vector<65x128xf32>
    %12 = vector.extract_strided_slice %11 {offsets = [0, 0], sizes = [16, 128], strides = [1, 1]} : vector<65x128xf32> to vector<16x128xf32>
    %13 = vector.extract_strided_slice %11 {offsets = [16, 0], sizes = [16, 128], strides = [1, 1]} : vector<65x128xf32> to vector<16x128xf32>
    %14 = vector.extract_strided_slice %11 {offsets = [32, 0], sizes = [32, 128], strides = [1, 1]} : vector<65x128xf32> to vector<32x128xf32>
    %15 = vector.extract_strided_slice %11 {offsets = [64, 0], sizes = [1, 128], strides = [1, 1]} : vector<65x128xf32> to vector<1x128xf32>
    %16 = arith.mulf %12, %12 : vector<16x128xf32>
    %17 = arith.subf %16, %13 : vector<16x128xf32>
    %cst_8 = arith.constant dense<0.000000e+00> : vector<128xf32>
    %18 = vector.multi_reduction <add>, %17, %cst_8 [0] : vector<16x128xf32> to vector<128xf32>
    %19 = vector.shape_cast %18 : vector<128xf32> to vector<1x128xf32>
    %cst_9 = arith.constant 5.000000e-01 : f32
    %20 = vector.broadcast %cst_9 : f32 to vector<1x128xf32>
    %21 = arith.mulf %20, %19 : vector<1x128xf32>
    %c0_10 = arith.constant 0 : index
    %c0_11 = arith.constant 0 : index
    %22 = vector.load %arg5[%c0_10, %c0_11] : memref<32x1xf32, #tpu.memory_space<vmem>>, vector<32x1xf32>
    %23 = vector.broadcast %22 : vector<32x1xf32> to vector<32x128xf32>
    %24 = arith.addf %14, %23 : vector<32x128xf32>
    %cst_12 = arith.constant 0.000000e+00 : f32
    %25 = vector.broadcast %cst_12 : f32 to vector<32x128xf32>
    %26 = arith.maximumf %24, %25 : vector<32x128xf32>
    %c0_13 = arith.constant 0 : index
    %c0_14 = arith.constant 0 : index
    %27 = vector.load %arg6[%c0_13, %c0_14] : memref<32x32xf32, #tpu.memory_space<vmem>>, vector<32x32xf32>
    %cst_15 = arith.constant dense<0.000000e+00> : vector<32x128xf32>
    %28 = tpu.matmul %27, %26, %cst_15 {dimension_numbers = #tpu.dot_dimension_numbers<[1], [0], [0], [1], [0, 0, 1, 1], [], []>} : vector<32x32xf32>, vector<32x128xf32>, vector<32x128xf32> -> vector<32x128xf32>
    %c0_16 = arith.constant 0 : index
    %c0_17 = arith.constant 0 : index
    %29 = vector.load %arg7[%c0_16, %c0_17] : memref<32x1xf32, #tpu.memory_space<vmem>>, vector<32x1xf32>
    %30 = vector.broadcast %29 : vector<32x1xf32> to vector<32x128xf32>
    %31 = arith.addf %28, %30 : vector<32x128xf32>
    %cst_18 = arith.constant 0.000000e+00 : f32
    %32 = vector.broadcast %cst_18 : f32 to vector<32x128xf32>
    %33 = arith.maximumf %31, %32 : vector<32x128xf32>
    %c0_19 = arith.constant 0 : index
    %c0_20 = arith.constant 0 : index
    %34 = vector.load %arg8[%c0_19, %c0_20] : memref<32x1xf32, #tpu.memory_space<vmem>>, vector<32x1xf32>
    %35 = vector.broadcast %34 : vector<32x1xf32> to vector<32x128xf32>
    %36 = arith.mulf %35, %33 : vector<32x128xf32>
    %cst_21 = arith.constant dense<0.000000e+00> : vector<128xf32>
    %37 = vector.multi_reduction <add>, %36, %cst_21 [0] : vector<32x128xf32> to vector<128xf32>
    %38 = vector.shape_cast %37 : vector<128xf32> to vector<1x128xf32>
    %39 = arith.addf %15, %21 : vector<1x128xf32>
    %40 = arith.addf %39, %38 : vector<1x128xf32>
    %c0_22 = arith.constant 0 : index
    %c0_23 = arith.constant 0 : index
    %41 = memref.load %arg9[%c0_22, %c0_23] : memref<1x1xf32, #tpu.memory_space<smem>>
    %42 = vector.broadcast %41 : f32 to vector<1x128xf32>
    %43 = arith.addf %40, %42 : vector<1x128xf32>
    %44 = math.absf %43 : vector<1x128xf32>
    %cst_24 = arith.constant 0.000000e+00 : f32
    %45 = vector.broadcast %cst_24 : f32 to vector<1x128xf32>
    %46 = arith.subf %45, %44 : vector<1x128xf32>
    %47 = math.exp %46 : vector<1x128xf32>
    %cst_25 = arith.constant 0.000000e+00 : f32
    %48 = vector.broadcast %cst_25 : f32 to vector<1x128xf32>
    %49 = arith.cmpf oge, %43, %48 : vector<1x128xf32>
    %cst_26 = arith.constant 1.000000e+00 : f32
    %50 = vector.broadcast %cst_26 : f32 to vector<1x128xf32>
    %51 = arith.addf %50, %47 : vector<1x128xf32>
    %cst_27 = arith.constant 1.000000e+00 : f32
    %52 = vector.broadcast %cst_27 : f32 to vector<1x128xf32>
    %53 = arith.divf %52, %51 : vector<1x128xf32>
    %cst_28 = arith.constant 1.000000e+00 : f32
    %54 = vector.broadcast %cst_28 : f32 to vector<1x128xf32>
    %55 = arith.addf %54, %47 : vector<1x128xf32>
    %56 = arith.divf %47, %55 : vector<1x128xf32>
    %57 = arith.select %49, %53, %56 : vector<1x128xi1>, vector<1x128xf32>
    %c0_29 = arith.constant 0 : index
    %c0_30 = arith.constant 0 : index
    %58 = vector.load %arg10[%c0_29, %c0_30] : memref<1x128xf32, #tpu.memory_space<vmem>>, vector<1x128xf32>
    tpu.vector_store %arg10[%c0_29, %c0_30], %57 {strides = array<i32>} : memref<1x128xf32, #tpu.memory_space<vmem>>, vector<1x128xf32>,
    return
  }
  func.func @transform_0(%arg0: i32) -> (i32, i32) {
    %c0_i32 = arith.constant 0 : i32
    %c0_i32_0 = arith.constant 0 : i32
    return %c0_i32, %arg0 : i32, i32
  }
  func.func @transform_1(%arg0: i32) -> (i32, i32) {
    %c0_i32 = arith.constant 0 : i32
    %c0_i32_0 = arith.constant 0 : i32
    %c0_i32_1 = arith.constant 0 : i32
    return %c0_i32, %c0_i32_0 : i32, i32
  }
  func.func @transform_2(%arg0: i32) -> (i32, i32) {
    %c0_i32 = arith.constant 0 : i32
    %c0_i32_0 = arith.constant 0 : i32
    %c0_i32_1 = arith.constant 0 : i32
    return %c0_i32, %c0_i32_0 : i32, i32
  }
  func.func @transform_3(%arg0: i32) -> (i32, i32) {
    %c0_i32 = arith.constant 0 : i32
    %c0_i32_0 = arith.constant 0 : i32
    %c0_i32_1 = arith.constant 0 : i32
    return %c0_i32, %c0_i32_0 : i32, i32
  }
  func.func @transform_4(%arg0: i32) -> (i32, i32) {
    %c0_i32 = arith.constant 0 : i32
    %c0_i32_0 = arith.constant 0 : i32
    %c0_i32_1 = arith.constant 0 : i32
    return %c0_i32, %c0_i32_0 : i32, i32
  }
  func.func @transform_5(%arg0: i32) -> (i32, i32) {
    %c0_i32 = arith.constant 0 : i32
    %c0_i32_0 = arith.constant 0 : i32
    %c0_i32_1 = arith.constant 0 : i32
    return %c0_i32, %c0_i32_0 : i32, i32
  }
  func.func @transform_6(%arg0: i32) -> (i32, i32) {
    %c0_i32 = arith.constant 0 : i32
    %c0_i32_0 = arith.constant 0 : i32
    %c0_i32_1 = arith.constant 0 : i32
    return %c0_i32, %c0_i32_0 : i32, i32
  }
  func.func @transform_7(%arg0: i32) -> (i32, i32) {
    %c0_i32 = arith.constant 0 : i32
    %c0_i32_0 = arith.constant 0 : i32
    %c0_i32_1 = arith.constant 0 : i32
    return %c0_i32, %c0_i32_0 : i32, i32
  }
  func.func @transform_8(%arg0: i32) -> (i32, i32) {
    %c0_i32 = arith.constant 0 : i32
    %c0_i32_0 = arith.constant 0 : i32
    %c0_i32_1 = arith.constant 0 : i32
    return %c0_i32, %c0_i32_0 : i32, i32
  }
  func.func @transform_9(%arg0: i32) -> (i32, i32) {
    %c0_i32 = arith.constant 0 : i32
    %c0_i32_0 = arith.constant 0 : i32
    return %c0_i32, %arg0 : i32, i32
  }
}

</mosaic_0001>

<bundles_post_ra>
// kernel: tpu_custom_call.1
= control target key start
LH: loop header
LB: loop body
LE: loop exit
PB: predicated region body
PF: predicated region fallthrough
CT: control target
= control target key end

     0   :  { %v1225_v1 = vmov 0.0   ;;  %vm1226_vm0 = vmmov 0   ;;  %vm62_vm1 = vcmask 64512   ;;  %v1227_v4 = vmov 0   ;;  %s1636_s0 = inlined_call_operand.vmem [shape: s32[8,128], index: 0, kind: input, shape index: {}]   ;;  %s1637_s1 = inlined_call_operand.vmem [shape: f32[200,8], index: 1, kind: input, shape index: {}]   ;;  %s1638_s2 = inlined_call_operand.vmem [shape: f32[200,1], index: 2, kind: input, shape index: {}]   ;;  %s1639_s3 = inlined_call_operand.vmem [shape: bf16[65,200], index: 3, kind: input, shape index: {}]   ;;  %s1640_s4 = inlined_call_operand.vmem [shape: f32[32,1], index: 4, kind: input, shape index: {}]   ;;  %s1641_s5 = inlined_call_operand.vmem [shape: f32[32,32], index: 5, kind: input, shape index: {}]   ;;  %s1642_s6 = inlined_call_operand.vmem [shape: f32[32,1], index: 6, kind: input, shape index: {}]   ;;  %s1643_s7 = inlined_call_operand.vmem [shape: f32[32,1], index: 7, kind: input, shape index: {}]   ;;  %s1644_s8 = inlined_call_operand.<no memory space> [shape: f32[1,1], index: 8, kind: input, shape index: {}]   ;;  %s1645_s9 = inlined_call_operand.hbm [shape: f32[1,128], index: 9, kind: output, shape index: {}]  }
   0x1   :  { %v35_v0 = vld [vmem:[%s1636_s0] sm:$0xff]  ;;  %1077 = vmatprep.subr.mxu0 %v1225_v1  ;;  %1079 = vmatprep.mubr.msk.f32.mxu0 %vm1226_vm0, %v1225_v1  ;;  %v38_v5 = vld [vmem:[%s1637_s1 + $0x8] sm:$0xff]  ;;  %v330_v7 = vld [vmem:[%s1638_s2 + $0x10] sm:$0xff] }
   0x2   :  { %v36_v2 = vcvt.s32.f32 %v35_v0  ;;  %v37_v3 = vld [vmem:[%s1637_s1] sm:$0xff]  ;;  %1181 = vset.pattern.permute.xlu0 %v1227_v4  ;;  %1182 = vset.pattern.permute.xlu1 %v1227_v4  ;;  %v329_v8 = vld [vmem:[%s1638_s2 + $0x8] sm:$0xff]  ;;  %v331_v9 = vld [vmem:[%s1638_s2 + $0x18] sm:$0xff] }
   0x3   :  { %637 = vmatprep.subr.bf16.mxu1 %v1227_v4  ;;  %v328_v6 = vld [vmem:[%s1638_s2] sm:$0xff]  ;;  %365 = vperm.xlu1 %1182, %v330_v7   ;;  %v39_v10 = vld [vmem:[%s1637_s1 + $0x10] sm:$0xff]  ;;  %v333_v12 = vld [vmem:[%s1638_s2 + $0x28] sm:$0xff] }
   0x4   :  { %1078 = vmatpush3.msra.mxu0 %v36_v2  ;;  %355 = vperm.xlu0 %1181, %v328_v6   ;;  %v332_v11 = vld [vmem:[%s1638_s2 + $0x20] sm:$0xff]  ;;  %v40_v13 = vld [vmem:[%s1637_s1 + $0x18] sm:$0xff]  ;;  %v334_v14 = vld [vmem:[%s1638_s2 + $0x30] sm:$0xff] }
   0x5   :  { %1080 = vmatmul.mubr.msk.f32.vlgmr.msra.gmra.mrb[0].mxu0 %vm62_vm1, %v37_v3  ;;  %v335_v15 = vld [vmem:[%s1638_s2 + $0x38] sm:$0xff]  ;;  %v41_v16 = vld [vmem:[%s1637_s1 + $0x20] sm:$0xff]  ;;  %v42_v18 = vld [vmem:[%s1637_s1 + $0x28] sm:$0xff] }
   0x6   :  { %1082 = vmatprep.mubr.msk.f32.mxu0 %vm1226_vm0, %v1225_v1  ;;  %v336_v17 = vld [vmem:[%s1638_s2 + $0x40] sm:$0xff]  ;;  %v337_v19 = vld [vmem:[%s1638_s2 + $0x48] sm:$0xff]  ;;  %v338_v20 = vld [vmem:[%s1638_s2 + $0x50] sm:$0xff] }
   0x7   :  { %370 = vperm.xlu1 %1182, %v331_v9  }
   0x8   :  { %360 = vperm.xlu0 %1181, %v329_v8  }
   0x9   :  { %1083 = vmatmul.mubr.msk.f32.gmra.mrb[2].mxu0 %vm62_vm1, %v38_v5 }
   0xa   :  { %1085 = vmatprep.mubr.msk.f32.mxu0 %vm1226_vm0, %v1225_v1 }
   0xb   :  { %380 = vperm.xlu1 %1182, %v333_v12  }
   0xc   :  { %375 = vperm.xlu0 %1181, %v332_v11  }
   0xd   :  { %1086 = vmatmul.mubr.msk.f32.gmra.mrb[4].mxu0 %vm62_vm1, %v39_v10 }
   0xe   :  { %1088 = vmatprep.mubr.msk.f32.mxu0 %vm1226_vm0, %v1225_v1 }
   0xf   :  { %390 = vperm.xlu1 %1182, %v335_v15  }
  0x10   :  { %385 = vperm.xlu0 %1181, %v334_v14  }
  0x11   :  { %1089 = vmatmul.mubr.msk.f32.gmra.mrb[6].mxu0 %vm62_vm1, %v40_v13 }
  0x12   :  { %1091 = vmatprep.mubr.msk.f32.mxu0 %vm1226_vm0, %v1225_v1 }
  0x13   :  { %400 = vperm.xlu1 %1182, %v337_v19  }
  0x14   :  { %395 = vperm.xlu0 %1181, %v336_v17  }
  0x15   :  { %1092 = vmatmul.mubr.msk.f32.gmra.mrb[8].mxu0 %vm62_vm1, %v41_v16 }
  0x16   :  { %1094 = vmatprep.mubr.msk.f32.mxu0 %vm1226_vm0, %v1225_v1 }
  0x17   :  { %15 = vsyncpa [#allocation4], 0  ;;  %v339_v21 = vld [vmem:[%s1638_s2 + $0x58] sm:$0xff]  ;;  %v43_v22 = vld [vmem:[%s1637_s1 + $0x30] sm:$0xff]  ;;  %vm617_vm2 = vcmask 588800   ;;  %s1229_s17 = smov [#allocation3]  }
  0x18   :  { %405 = vperm.xlu0 %1181, %v338_v20   ;;  %v340_v23 = vld [vmem:[%s1638_s2 + $0x60] sm:$0xff]  ;;  %410 = vperm.xlu1 %1182, %v339_v21   ;;  %v341_v24 = vld [vmem:[%s1638_s2 + $0x68] sm:$0xff]  ;;  %v44_v25 = vld [vmem:[%s1637_s1 + $0x38] sm:$0xff]  ;;  %v1228_v12 = vmov 1.0|1.0   ;;  %s942_s18 = sshll.u32 %s1229_s17, 4  ;;  %s943_s18 = int_to_ptr.vmem [resolvable:$true] %s942_s18 }
  0x19   :  { %1095 = vmatmul.mubr.msk.f32.gmra.mrb[10].mxu0 %vm62_vm1, %v42_v18  ;;  %v342_v26 = vld [vmem:[%s1638_s2 + $0x70] sm:$0xff]  ;;  %v343_v27 = vld [vmem:[%s1638_s2 + $0x78] sm:$0xff]  ;;  %v45_v28 = vld [vmem:[%s1637_s1 + $0x40] sm:$0xff]  ;;  %s1201_s19 = scalar_lea.vmem %s943_s18, 16  ;;  %p1206_p1 = scmp.lt.s32.totalorder %s943_s18, %s943_s18 }
  0x1a   :  { %1097 = vmatprep.mubr.msk.f32.mxu0 %vm1226_vm0, %v1225_v1  ;;  %v344_v29 = vld [vmem:[%s1638_s2 + $0x80] sm:$0xff]  ;;  %v345_v30 = vld [vmem:[%s1638_s2 + $0x88] sm:$0xff]  ;;  %v346_v32 = vld [vmem:[%s1638_s2 + $0x90] sm:$0xff]  ;;  %p1202_p0 = scmp.ne.s32.totalorder %s943_s18, %s1201_s19 }
  0x1b   :  { %v46_v31 = vld [vmem:[%s1637_s1 + $0x48] sm:$0xff]  ;;  %v347_v33 = vld [vmem:[%s1638_s2 + $0x98] sm:$0xff]  ;;  %v47_v34 = vld [vmem:[%s1637_s1 + $0x50] sm:$0xff] }
  0x1c   :  { %415 = vperm.xlu0 %1181, %v340_v23   ;;  %420 = vperm.xlu1 %1182, %v341_v24   ;;  %v348_v35 = vld [vmem:[%s1638_s2 + $0xa0] sm:$0xff]  ;;  %v349_v36 = vld [vmem:[%s1638_s2 + $0xa8] sm:$0xff]  ;;  %v48_v37 = vld [vmem:[%s1637_s1 + $0x58] sm:$0xff] }
  0x1d   :  { %1098 = vmatmul.mubr.msk.f32.gmra.mrb[12].mxu0 %vm62_vm1, %v43_v22  ;;  %v350_v38 = vld [vmem:[%s1638_s2 + $0xb0] sm:$0xff]  ;;  %v351_v39 = vld [vmem:[%s1638_s2 + $0xb8] sm:$0xff]  ;;  %v49_v40 = vld [vmem:[%s1637_s1 + $0x60] sm:$0xff] }
  0x1e   :  { %1100 = vmatprep.mubr.msk.f32.mxu0 %vm1226_vm0, %v1225_v1  ;;  %v352_v41 = vld [vmem:[%s1638_s2 + $0xc0] sm:$0xff]  ;;  %v50_v43 = vld [vmem:[%s1637_s1 + $0x68] sm:$0xff]  ;;  %v723_v45 = vld [vmem:[%s1640_s4 + $0x10] sm:$0xff] }
  0x1f   :  { %v721_v42 = vld [vmem:[%s1640_s4] sm:$0xff]  ;;  %v722_v44 = vld [vmem:[%s1640_s4 + $0x8] sm:$0xff]  ;;  %v51_v46 = vld [vmem:[%s1637_s1 + $0x70] sm:$0xff] }
  0x20   :  { %425 = vperm.xlu0 %1181, %v342_v26   ;;  %430 = vperm.xlu1 %1182, %v343_v27   ;;  %v724_v47 = vld [vmem:[%s1640_s4 + $0x18] sm:$0xff]  ;;  %v757_v48 = vld [vmem:[%s1642_s6] sm:$0xff]  ;;  %v758_v50 = vld [vmem:[%s1642_s6 + $0x8] sm:$0xff] }
  0x21   :  { %1101 = vmatmul.mubr.msk.f32.gmra.mrb[14].mxu0 %vm62_vm1, %v44_v25  ;;  %v52_v49 = vld [vmem:[%s1637_s1 + $0x78] sm:$0xff]  ;;  %v759_v51 = vld [vmem:[%s1642_s6 + $0x10] sm:$0xff]  ;;  %v53_v52 = vld [vmem:[%s1637_s1 + $0x80] sm:$0xff] }
  0x22   :  { %1103 = vmatprep.mubr.msk.f32.mxu0 %vm1226_vm0, %v1225_v1  ;;  %v760_v53 = vld [vmem:[%s1642_s6 + $0x18] sm:$0xff]  ;;  %v883_v54 = vld [vmem:[%s1643_s7] sm:$0xff]  ;;  %v54_v55 = vld [vmem:[%s1637_s1 + $0x88] sm:$0xff] }
  0x23   :  { %v884_v56 = vld [vmem:[%s1643_s7 + $0x8] sm:$0xff]  ;;  %v885_v57 = vld [vmem:[%s1643_s7 + $0x10] sm:$0xff]  ;;  %v886_v59 = vld [vmem:[%s1643_s7 + $0x18] sm:$0xff] }
  0x24   :  { %435 = vperm.xlu0 %1181, %v344_v29   ;;  %440 = vperm.xlu1 %1182, %v345_v30   ;;  %v55_v58 = vld [vmem:[%s1637_s1 + $0x90] sm:$0xff]  ;;  %v56_v60 = vld [vmem:[%s1637_s1 + $0x98] sm:$0xff]  ;;  %v57_v61 = vld [vmem:[%s1637_s1 + $0xa0] sm:$0xff] }
  0x25   :  { %1104 = vmatmul.mubr.msk.f32.gmra.mrb[16].mxu0 %vm62_vm1, %v45_v28  ;;  %v58_v62 = vld [vmem:[%s1637_s1 + $0xa8] sm:$0xff]  ;;  %v59_v63 = vld [vmem:[%s1637_s1 + $0xb0] sm:$0xff]  ;;  %v60_v0 = vld [vmem:[%s1637_s1 + $0xb8] sm:$0xff] }
  0x26   :  { %1106 = vmatprep.mubr.msk.f32.mxu0 %vm1226_vm0, %v1225_v1  ;;  %v61_v2 = vld [vmem:[%s1637_s1 + $0xc0] sm:$0xff] }
  0x27   :  { %v1185_v3 = vld [vmem:[%s1639_s3 + $0x4] ss:$8 sps:$4 sm:$0xff]  }
  0x28   :  { %445 = vperm.xlu0 %1181, %v346_v32   ;;  %450 = vperm.xlu1 %1182, %v347_v33  }
  0x29   :  { %1107 = vmatmul.mubr.msk.f32.gmra.mrb[18].mxu0 %vm62_vm1, %v46_v31  ;;  %1034 = vmatprep.mubr.msk.bf16.mxu1 %vm617_vm2, %v1185_v3 }
  0x2a   :  { %1109 = vmatprep.mubr.msk.f32.mxu0 %vm1226_vm0, %v1225_v1 }
  0x2c   :  { %455 = vperm.xlu0 %1181, %v348_v35   ;;  %460 = vperm.xlu1 %1182, %v349_v36  }
  0x2d   :  { %1110 = vmatmul.mubr.msk.f32.gmra.mrb[20].mxu0 %vm62_vm1, %v47_v34 }
  0x2e   :  { %1112 = vmatprep.mubr.msk.f32.mxu0 %vm1226_vm0, %v1225_v1 }
  0x30   :  { %465 = vperm.xlu0 %1181, %v350_v38   ;;  %470 = vperm.xlu1 %1182, %v351_v39  }
  0x31   :  { %1113 = vmatmul.mubr.msk.f32.gmra.mrb[22].mxu0 %vm62_vm1, %v48_v37 }
  0x32   :  { %1115 = vmatprep.mubr.msk.f32.mxu0 %vm1226_vm0, %v1225_v1 }
  0x34   :  { %475 = vperm.xlu0 %1181, %v352_v41   ;;  %727 = vperm.xlu1 %1182, %v721_v42  }
  0x35   :  { %1116 = vmatmul.mubr.msk.f32.gmra.mrb[24].mxu0 %vm62_vm1, %v49_v40 }
  0x36   :  { %1118 = vmatprep.mubr.msk.f32.mxu0 %vm1226_vm0, %v1225_v1 }
  0x38   :  { %732 = vperm.xlu0 %1181, %v722_v44   ;;  %737 = vperm.xlu1 %1182, %v723_v45  }
  0x39   :  { %1119 = vmatmul.mubr.msk.f32.gmra.mrb[26].mxu0 %vm62_vm1, %v50_v43 }
  0x3a   :  { %1121 = vmatprep.mubr.msk.f32.mxu0 %vm1226_vm0, %v1225_v1 }
  0x3c   :  { %742 = vperm.xlu0 %1181, %v724_v47   ;;  %763 = vperm.xlu1 %1182, %v757_v48  }
  0x3d   :  { %1122 = vmatmul.mubr.msk.f32.gmra.mrb[28].mxu0 %vm62_vm1, %v51_v46 }
  0x3e   :  { %1124 = vmatprep.mubr.msk.f32.mxu0 %vm1226_vm0, %v1225_v1 }
  0x40   :  { %768 = vperm.xlu0 %1181, %v758_v50   ;;  %773 = vperm.xlu1 %1182, %v759_v51  }
  0x41   :  { %1125 = vmatmul.mubr.msk.f32.gmra.mrb[30].mxu0 %vm62_vm1, %v52_v49 }
  0x42   :  { %1127 = vmatprep.mubr.msk.f32.mxu0 %vm1226_vm0, %v1225_v1 }
  0x44   :  { %778 = vperm.xlu0 %1181, %v760_v53   ;;  %889 = vperm.xlu1 %1182, %v883_v54  }
  0x45   :  { %1128 = vmatmul.mubr.msk.f32.gmra.mrb[32].mxu0 %vm62_vm1, %v53_v52 }
  0x46   :  { %1130 = vmatprep.mubr.msk.f32.mxu0 %vm1226_vm0, %v1225_v1 }
  0x48   :  { %894 = vperm.xlu0 %1181, %v884_v56   ;;  %899 = vperm.xlu1 %1182, %v885_v57  }
  0x49   :  { %1131 = vmatmul.mubr.msk.f32.gmra.mrb[34].mxu0 %vm62_vm1, %v54_v55 }
  0x4a   :  { %1133 = vmatprep.mubr.msk.f32.mxu0 %vm1226_vm0, %v1225_v1 }
  0x4c   :  { %904 = vperm.xlu0 %1181, %v886_v59  }
  0x4d   :  { %1134 = vmatmul.mubr.msk.f32.gmra.mrb[36].mxu0 %vm62_vm1, %v55_v58 }
  0x4e   :  { %1136 = vmatprep.mubr.msk.f32.mxu0 %vm1226_vm0, %v1225_v1 }
  0x51   :  { %1137 = vmatmul.mubr.msk.f32.gmra.mrb[38].mxu0 %vm62_vm1, %v56_v60 }
  0x52   :  { %1139 = vmatprep.mubr.msk.f32.mxu0 %vm1226_vm0, %v1225_v1 }
  0x55   :  { %1140 = vmatmul.mubr.msk.f32.gmra.mrb[40].mxu0 %vm62_vm1, %v57_v61 }
  0x56   :  { %1142 = vmatprep.mubr.msk.f32.mxu0 %vm1226_vm0, %v1225_v1 }
  0x59   :  { %1143 = vmatmul.mubr.msk.f32.gmra.mrb[42].mxu0 %vm62_vm1, %v58_v62 }
  0x5a   :  { %1145 = vmatprep.mubr.msk.f32.mxu0 %vm1226_vm0, %v1225_v1 }
  0x5d   :  { %1146 = vmatmul.mubr.msk.f32.gmra.mrb[44].mxu0 %vm62_vm1, %v59_v63 }
  0x5e   :  { %1148 = vmatprep.mubr.msk.f32.mxu0 %vm1226_vm0, %v1225_v1 }
  0x61   :  { %1149 = vmatmul.mubr.msk.f32.gmra.mrb[46].mxu0 %vm62_vm1, %v60_v0 }
  0x62   :  { %1151 = vmatprep.mubr.msk.f32.mxu0 %vm1226_vm0, %v1225_v1 }
  0x65   :  { %1152 = vmatmul.mubr.msk.f32.gmra.mrb[48].mxu0 %vm62_vm1, %v61_v2 }
  0x82   :  { %v366_v11 = vpop.permute.xlu1 %365 }
  0x83   :  { %v356_v5 = vpop.permute.xlu0 %355 }
  0x86   :  { %v371_v15 = vpop.permute.xlu1 %370 }
  0x87   :  { %v361_v8 = vpop.permute.xlu0 %360 }
  0x8a   :  { %v381_v21 = vpop.permute.xlu1 %380 }
  0x8b   :  { %v376_v20 = vpop.permute.xlu0 %375 }
  0x8e   :  { %v391_v27 = vpop.permute.xlu1 %390 }
  0x8f   :  { %v386_v26 = vpop.permute.xlu0 %385 }
  0x92   :  { %v401_v33 = vpop.permute.xlu1 %400 }
  0x93   :  { %v396_v32 = vpop.permute.xlu0 %395 }
  0x97   :  { %v406_v38 = vpop.permute.xlu0 %405  ;;  %v411_v39 = vpop.permute.xlu1 %410 }
  0x9b   :  { %v416_v44 = vpop.permute.xlu0 %415  ;;  %v421_v45 = vpop.permute.xlu1 %420 }
  0x9f   :  { %v426_v50 = vpop.permute.xlu0 %425  ;;  %v431_v51 = vpop.permute.xlu1 %430 }
  0xa3   :  { %v436_v56 = vpop.permute.xlu0 %435  ;;  %v441_v57 = vpop.permute.xlu1 %440 }
  0xa7   :  { %v446_v62 = vpop.permute.xlu0 %445  ;;  %v451_v63 = vpop.permute.xlu1 %450 }
  0xd8   :  { %v204_v6 = vpop.f32.mrb[0].mxu0 }
  0xd9   :  { %v1081_v7 = vpop.f32.mrb[1].mxu0  ;;  %vm478_vm3 = vcmp.eq.f32.partialorder %v204_v6, %v356_v5  ;;  %v456_v6 = vpop.permute.xlu0 %455 }
  0xda   :  { %v461_v7 = vpop.permute.xlu1 %460 }
  0xdc   :  { %v209_v9 = vpop.f32.mrb[2].mxu0 }
  0xdd   :  { %vm479_vm4 = vcmp.eq.f32.partialorder %v209_v9, %v361_v8  ;;  %v1084_v10 = vpop.f32.mrb[3].mxu0 }
  0xde   :  { %vm1010_vm5 = vmpackc.low %vm479_vm4, %vm478_vm3 }
  0xdf   :  { %1011 = vmatpush1.bf16.msk.msra.mxu1 %vm1010_vm5, %v1228_v12 }
  0xe0   :  { %v214_v13 = vpop.f32.mrb[4].mxu0  ;;  %639 = vmatprep.subr.bf16.mxu1 %v1227_v4 }
  0xe1   :  { %v1087_v14 = vpop.f32.mrb[5].mxu0  ;;  %vm480_vm6 = vcmp.eq.f32.partialorder %v214_v13, %v366_v11  ;;  %v466_v13 = vpop.permute.xlu0 %465 }
  0xe2   :  { %v471_v14 = vpop.permute.xlu1 %470 }
  0xe4   :  { %v219_v16 = vpop.f32.mrb[6].mxu0 }
  0xe5   :  { %vm481_vm7 = vcmp.eq.f32.partialorder %v219_v16, %v371_v15  ;;  %v1090_v17 = vpop.f32.mrb[7].mxu0 }
  0xe6   :  { %vm1012_vm8 = vmpackc.low %vm481_vm7, %vm480_vm6  ;;  %v476_v17 = vpop.permute.xlu0 %475 }
  0xe7   :  { %1013 = vmatpush1.bf16.msk.msra.mxu1 %vm1012_vm8, %v1228_v12 }
  0xe8   :  { %v224_v18 = vpop.f32.mrb[8].mxu0  ;;  %641 = vmatprep.subr.bf16.mxu1 %v1227_v4 }
  0xe9   :  { %v1093_v19 = vpop.f32.mrb[9].mxu0  ;;  %vm482_vm9 = vcmp.eq.f32.partialorder %v224_v18, %v376_v20 }
  0xec   :  { %v229_v22 = vpop.f32.mrb[10].mxu0 }
  0xed   :  { %vm483_vm10 = vcmp.eq.f32.partialorder %v229_v22, %v381_v21  ;;  %v1096_v23 = vpop.f32.mrb[11].mxu0 }
  0xee   :  { %vm1014_vm11 = vmpackc.low %vm483_vm10, %vm482_vm9  ;;  %v1183_v23 = vld [vmem:[%s1639_s3] ss:$8 sps:$4 sm:$0xff]  }
  0xef   :  { %1015 = vmatpush1.bf16.msk.msra.mxu1 %vm1014_vm11, %v1228_v12 }
  0xf0   :  { %v234_v24 = vpop.f32.mrb[12].mxu0  ;;  %643 = vmatprep.subr.bf16.mxu1 %v1227_v4 }
  0xf1   :  { %v1099_v25 = vpop.f32.mrb[13].mxu0  ;;  %vm484_vm12 = vcmp.eq.f32.partialorder %v234_v24, %v386_v26  ;;  %v1191_v24 = vld [vmem:[%s1639_s3 + $0x20] ss:$8 sps:$4 sm:$0xff]  }
  0xf2   :  { %v1192_v25 = vld [vmem:[%s1639_s3 + $0x34] ss:$8 sps:$4 sm:$0xff]   ;;  %v574_v26 = vld [vmem:[%s1639_s3 + $0x40] sm:$0x11] }
  0xf4   :  { %v239_v28 = vpop.f32.mrb[14].mxu0 }
  0xf5   :  { %vm485_vm13 = vcmp.eq.f32.partialorder %v239_v28, %v391_v27  ;;  %v1102_v29 = vpop.f32.mrb[15].mxu0  ;;  %v1194_v27 = vld [vmem:[%s1639_s3 + $0x30] ss:$8 sps:$4 sm:$0xff]   ;;  %v1009_v28 = vcombine.high %v574_v26, %v574_v26 }
  0xf6   :  { %vm1016_vm14 = vmpackc.low %vm485_vm13, %vm484_vm12  ;;  %v1008_v29 = vcombine.low %v574_v26, %v574_v26 }
  0xf7   :  { %1017 = vmatpush1.bf16.msk.msra.mxu1 %vm1016_vm14, %v1228_v12 }
  0xf8   :  { %v244_v30 = vpop.f32.mrb[16].mxu0  ;;  %645 = vmatprep.subr.bf16.mxu1 %v1227_v4 }
  0xf9   :  { %v1105_v31 = vpop.f32.mrb[17].mxu0  ;;  %vm486_vm15 = vcmp.eq.f32.partialorder %v244_v30, %v396_v32  ;;  %v753_v30 = vld [vmem:[%s1641_s5] sm:$0xff] }
  0xfc   :  { %v249_v34 = vpop.f32.mrb[18].mxu0 }
  0xfd   :  { %vm487_vm0 = vcmp.eq.f32.partialorder %v249_v34, %v401_v33  ;;  %v1108_v35 = vpop.f32.mrb[19].mxu0 }
  0xfe   :  { %vm1018_vm1 = vmpackc.low %vm487_vm0, %vm486_vm15 }
  0xff   :  { %1019 = vmatpush1.bf16.msk.msra.mxu1 %vm1018_vm1, %v1228_v12 }
 0x100   :  { %v254_v36 = vpop.f32.mrb[20].mxu0  ;;  %647 = vmatprep.subr.bf16.mxu1 %v1227_v4 }
 0x101   :  { %v1111_v37 = vpop.f32.mrb[21].mxu0  ;;  %vm488_vm3 = vcmp.eq.f32.partialorder %v254_v36, %v406_v38 }
 0x104   :  { %v259_v40 = vpop.f32.mrb[22].mxu0 }
 0x105   :  { %vm489_vm4 = vcmp.eq.f32.partialorder %v259_v40, %v411_v39  ;;  %v1114_v41 = vpop.f32.mrb[23].mxu0 }
 0x106   :  { %vm1020_vm5 = vmpackc.low %vm489_vm4, %vm488_vm3 }
 0x107   :  { %1021 = vmatpush1.bf16.msk.msra.mxu1 %vm1020_vm5, %v1228_v12 }
 0x108   :  { %v264_v42 = vpop.f32.mrb[24].mxu0  ;;  %649 = vmatprep.subr.bf16.mxu1 %v1227_v4 }
 0x109   :  { %v1117_v43 = vpop.f32.mrb[25].mxu0  ;;  %vm490_vm6 = vcmp.eq.f32.partialorder %v264_v42, %v416_v44 }
 0x10c   :  { %v269_v46 = vpop.f32.mrb[26].mxu0 }
 0x10d   :  { %vm491_vm7 = vcmp.eq.f32.partialorder %v269_v46, %v421_v45  ;;  %v1120_v47 = vpop.f32.mrb[27].mxu0  ;;  %v728_v45 = vpop.permute.xlu1 %727 }
 0x10e   :  { %vm1022_vm8 = vmpackc.low %vm491_vm7, %vm490_vm6 }
 0x10f   :  { %1023 = vmatpush1.bf16.msk.msra.mxu1 %vm1022_vm8, %v1228_v12 }
 0x110   :  { %v274_v48 = vpop.f32.mrb[28].mxu0  ;;  %651 = vmatprep.subr.bf16.mxu1 %v1227_v4 }
 0x111   :  { %v1123_v49 = vpop.f32.mrb[29].mxu0  ;;  %vm492_vm9 = vcmp.eq.f32.partialorder %v274_v48, %v426_v50  ;;  %v733_v50 = vpop.permute.xlu0 %732 }
 0x114   :  { %v279_v52 = vpop.f32.mrb[30].mxu0 }
 0x115   :  { %vm493_vm10 = vcmp.eq.f32.partialorder %v279_v52, %v431_v51  ;;  %v1126_v53 = vpop.f32.mrb[31].mxu0 }
 0x116   :  { %vm1024_vm11 = vmpackc.low %vm493_vm10, %vm492_vm9  ;;  %vm633_vm10 = vcmask 1043456  }
 0x117   :  { %1025 = vmatpush1.bf16.msk.msra.mxu1 %vm1024_vm11, %v1228_v12  ;;  %vm781_vm11 = vcmask 261120  }
 0x118   :  { %v284_v54 = vpop.f32.mrb[32].mxu0  ;;  %653 = vmatprep.subr.bf16.mxu1 %v1227_v4 }
 0x119   :  { %v1129_v55 = vpop.f32.mrb[33].mxu0  ;;  %vm494_vm12 = vcmp.eq.f32.partialorder %v284_v54, %v436_v56 }
 0x11c   :  { %v289_v58 = vpop.f32.mrb[34].mxu0 }
 0x11d   :  { %vm495_vm13 = vcmp.eq.f32.partialorder %v289_v58, %v441_v57  ;;  %v1132_v59 = vpop.f32.mrb[35].mxu0 }
 0x11e   :  { %vm1026_vm14 = vmpackc.low %vm495_vm13, %vm494_vm12 }
 0x11f   :  { %1027 = vmatpush1.bf16.msk.msra.mxu1 %vm1026_vm14, %v1228_v12 }
 0x120   :  { %v294_v60 = vpop.f32.mrb[36].mxu0  ;;  %655 = vmatprep.subr.bf16.mxu1 %v1227_v4 }
 0x121   :  { %v1135_v61 = vpop.f32.mrb[37].mxu0  ;;  %vm496_vm15 = vcmp.eq.f32.partialorder %v294_v60, %v446_v62  ;;  %v738_v60 = vpop.permute.xlu1 %737 }
 0x124   :  { %v299_v0 = vpop.f32.mrb[38].mxu0 }
 0x125   :  { %vm497_vm0 = vcmp.eq.f32.partialorder %v299_v0, %v451_v63  ;;  %v1138_v2 = vpop.f32.mrb[39].mxu0  ;;  %v743_v0 = vpop.permute.xlu0 %742 }
 0x126   :  { %vm1028_vm1 = vmpackc.low %vm497_vm0, %vm496_vm15 }
 0x127   :  { %1029 = vmatpush1.bf16.msk.msra.mxu1 %vm1028_vm1, %v1228_v12 }
 0x128   :  { %v304_v3 = vpop.f32.mrb[40].mxu0  ;;  %657 = vmatprep.subr.bf16.mxu1 %v1227_v4 }
 0x129   :  { %v1141_v5 = vpop.f32.mrb[41].mxu0  ;;  %vm498_vm3 = vcmp.eq.f32.partialorder %v304_v3, %v456_v6 }
 0x12c   :  { %v309_v8 = vpop.f32.mrb[42].mxu0 }
 0x12d   :  { %vm499_vm4 = vcmp.eq.f32.partialorder %v309_v8, %v461_v7  ;;  %v1144_v9 = vpop.f32.mrb[43].mxu0 }
 0x12e   :  { %vm1030_vm5 = vmpackc.low %vm499_vm4, %vm498_vm3 }
 0x12f   :  { %1031 = vmatpush1.bf16.msk.msra.mxu1 %vm1030_vm5, %v1228_v12 }
 0x130   :  { %v314_v10 = vpop.f32.mrb[44].mxu0  ;;  %659 = vmatprep.subr.bf16.mxu1 %v1227_v4 }
 0x131   :  { %v1147_v11 = vpop.f32.mrb[45].mxu0  ;;  %vm500_vm6 = vcmp.eq.f32.partialorder %v314_v10, %v466_v13 }
 0x134   :  { %v319_v15 = vpop.f32.mrb[46].mxu0 }
 0x135   :  { %vm501_vm7 = vcmp.eq.f32.partialorder %v319_v15, %v471_v14  ;;  %v1150_v16 = vpop.f32.mrb[47].mxu0  ;;  %v754_v15 = vld [vmem:[%s1641_s5 + $0x8] sm:$0xff] }
 0x136   :  { %vm1032_vm8 = vmpackc.low %vm501_vm7, %vm500_vm6 }
 0x137   :  { %1033 = vmatpush1.bf16.msk.msra.mxu1 %vm1032_vm8, %v1228_v12  ;;  %v1186_v12 = vld [vmem:[%s1639_s3 + $0x14] ss:$8 sps:$4 sm:$0xff]  }
 0x138   :  { %v324_v18 = vpop.f32.mrb[48].mxu0  ;;  %661 = vmatprep.subr.bf16.mxu1 %v1227_v4  ;;  %v1188_v4 = vld [vmem:[%s1639_s3 + $0x10] ss:$8 sps:$4 sm:$0xff]  }
 0x139   :  { %vm502_vm9 = vcmp.eq.f32.partialorder %v324_v18, %v476_v17  ;;  %v1153_v19 = vpop.f32.mrb[49].mxu0  ;;  %v755_v17 = vld [vmem:[%s1641_s5 + $0x10] sm:$0xff] }
 0x13a   :  { %v999_v20 = vsel %vm502_vm9, 1.0, %v1225_v1  ;;  %v1189_v1 = vld [vmem:[%s1639_s3 + $0x24] ss:$8 sps:$4 sm:$0xff]   ;;  %v756_v19 = vld [vmem:[%s1641_s5 + $0x18] sm:$0xff] }
 0x13b   :  { %v565_v21 = vpack.c.bf16 %v999_v20, %v999_v20  ;;  %v764_v20 = vpop.permute.xlu1 %763 }
 0x13d   :  { %v635_v22 = vsel %vm633_vm10, %v565_v21, 0  ;;  %v769_v21 = vpop.permute.xlu0 %768 }
 0x13e   :  { %662 = vmatpush1.bf16.msra.mxu1 %v635_v22 }
 0x13f   :  { %v774_v22 = vpop.permute.xlu1 %773 }
 0x141   :  { %670 = vmatmul.mubr.bf16.vlgmr.msra.gmra.mrb[0].mxu1 %v1183_v23  ;;  %v779_v23 = vpop.permute.xlu0 %778 }
 0x142   :  { %1035 = vmatprep.mubr.msk.bf16.mxu1 %vm617_vm2, %v1186_v12 }
 0x149   :  { %678 = vmatmul.mubr.bf16.gmra.mrb[4].mxu1 %v1188_v4 }
 0x14a   :  { %1036 = vmatprep.mubr.msk.bf16.mxu1 %vm617_vm2, %v1189_v1 }
 0x151   :  { %686 = vmatmul.mubr.bf16.gmra.mrb[8].mxu1 %v1191_v24 }
 0x152   :  { %1037 = vmatprep.mubr.msk.bf16.mxu1 %vm617_vm2, %v1192_v25  ;;  %v890_v25 = vpop.permute.xlu1 %889 }
 0x159   :  { %694 = vmatmul.mubr.bf16.gmra.mrb[12].mxu1 %v1194_v27  ;;  %v895_v27 = vpop.permute.xlu0 %894 }
 0x15a   :  { %1038 = vmatprep.mubr.msk.bf16.mxu1 %vm617_vm2, %v1009_v28 }
 0x161   :  { %702 = vmatmul.mubr.bf16.gmra.mrb[16].mxu1 %v1008_v29 }
 0x162   :  { %1162 = vmatprep.mubr.msk.f32.mxu1 %vm781_vm11, %v753_v30 }
 0x214   :  { %v671_v31 = vpop.f32.mrb[0].mxu1 }
 0x215   :  { %v673_v32 = vpop.f32.mrb[1].mxu1  ;;  %v709_v35 = vmul.f32 %v671_v31, %v671_v31 }
 0x216   :  { %v674_v33 = vpop.f32.mrb[2].mxu1 }
 0x217   :  { %v676_v34 = vpop.f32.mrb[3].mxu1  ;;  %v710_v37 = vmul.f32 %v674_v33, %v674_v33 }
 0x21c   :  { %v679_v36 = vpop.f32.mrb[4].mxu1 }
 0x21d   :  { %v711_v38 = vsub.f32 %v709_v35, %v679_v36  ;;  %v681_v39 = vpop.f32.mrb[5].mxu1 }
 0x21e   :  { %v682_v40 = vpop.f32.mrb[6].mxu1 }
 0x21f   :  { %v712_v41 = vsub.f32 %v710_v37, %v682_v40  ;;  %v684_v42 = vpop.f32.mrb[7].mxu1  ;;  %v905_v40 = vpop.permute.xlu0 %904 }
 0x221   :  { %v713_v43 = vadd.f32 %v712_v41, %v711_v38  ;;  %v900_v38 = vpop.permute.xlu1 %899 }
 0x223   :  { %v714_v44 = vrot.slane %v713_v43, 4 }
 0x224   :  { %v687_v46 = vpop.f32.mrb[8].mxu1 }
 0x225   :  { %v715_v47 = vadd.f32 %v714_v44, %v713_v43  ;;  %v745_v48 = vadd.f32 %v728_v45, %v687_v46  ;;  %v689_v49 = vpop.f32.mrb[9].mxu1 }
 0x226   :  { %v690_v51 = vpop.f32.mrb[10].mxu1 }
 0x227   :  { %v716_v52 = vrot.slane %v715_v47, 2  ;;  %v746_v53 = vadd.f32 %v733_v50, %v690_v51  ;;  %v692_v54 = vpop.f32.mrb[11].mxu1  ;;  %v749_v55 = vmax.f32 %v745_v48, 0.0  ;;  %v923_v50 = vstv %s1644_s8  ;;  %s1205_s8 = scalar_lea.vmem %s943_s18, 32 }
 0x228   :  { %p1207_p2 = scmp.lt.s32.totalorder %s1205_s8, %s1201_s19 }
 0x229   :  { %v750_v56 = vmax.f32 %v746_v53, 0.0  ;;  %v717_v57 = vadd.f32 %v716_v52, %v715_v47 }
 0x22a   :  { %p1208_p3 = por %p1207_p2, %p1206_p1 }
 0x22b   :  { %v1168_v58 = vpack.c.bf16 %v750_v56, %v749_v55  ;;  %v718_v59 = vrot.slane %v717_v57, 1 }
 0x22c   :  { %v695_v61 = vpop.f32.mrb[12].mxu1  ;;  %p1209_p4 = pnand %p1208_p3, %p1202_p0 }
 0x22d   :  { %v747_v62 = vadd.f32 %v738_v60, %v695_v61  ;;  %v697_v63 = vpop.f32.mrb[13].mxu1  ;;  %1169 = vmatprep.subr.bf16.mxu1 %v1168_v58  ;;  %v719_v6 = vadd.f32 %v718_v59, %v717_v57 }
 0x22e   :  { %v698_v2 = vpop.f32.mrb[14].mxu1  ;;  %1171 = vmatpush3.bf16.msra.mxu1 %v1168_v58 }
 0x22f   :  { %v748_v3 = vadd.f32 %v743_v0, %v698_v2  ;;  %v700_v5 = vpop.f32.mrb[15].mxu1  ;;  %v751_v7 = vmax.f32 %v747_v62, 0.0  ;;  %v720_v10 = vmul.f32 0.5, %v719_v6 }
 0x231   :  { %v752_v8 = vmax.f32 %v748_v3, 0.0 }
 0x233   :  { %v1172_v9 = vpack.c.bf16 %v752_v8, %v751_v7 }
 0x234   :  { %v703_v11 = vpop.f32.mrb[16].mxu1 }
 0x235   :  { %v920_v13 = vadd.f32 %v720_v10, %v703_v11  ;;  %1173 = vmatprep.subr.bf16.mxu1 %v1172_v9  ;;  %v705_v14 = vpop.f32.mrb[17].mxu1 }
 0x236   :  { %1175 = vmatpush3.bf16.msra.mxu1 %v1172_v9  ;;  %v706_v16 = vpop.f32.mrb[18].mxu1 }
 0x237   :  { %v707_v18 = vpop.f32.mrb[19].mxu1 }
 0x239   :  { %1163 = vmatmul.mubr.msk.f32.vlgmr.msra.gmra.mrb[20].mxu1 %vm781_vm11, %v754_v15 }
 0x23a   :  { %1165 = vmatprep.mubr.msk.f32.mxu1 %vm781_vm11, %v755_v17 }
 0x23d   :  { %1166 = vmatmul.mubr.msk.f32.gmra.mrb[22].mxu1 %vm781_vm11, %v756_v19 }
 0x30c   :  { %v1164_v12 = vpop.f32.mrb[20].mxu1 }
 0x30d   :  { %v866_v4 = vadd.f32 %v1164_v12, %v769_v21  ;;  %v860_v1 = vpop.f32.mrb[21].mxu1 }
 0x30e   :  { %v861_v24 = vadd.f32 %v860_v1, %v764_v20 }
 0x30f   :  { %v880_v26 = vmax.f32 %v866_v4, 0.0 }
 0x310   :  { %v879_v28 = vmax.f32 %v861_v24, 0.0  ;;  %v1167_v29 = vpop.f32.mrb[22].mxu1 }
 0x311   :  { %v908_v30 = vmul.f32 %v895_v27, %v880_v26  ;;  %v876_v31 = vadd.f32 %v1167_v29, %v779_v23  ;;  %v870_v32 = vpop.f32.mrb[23].mxu1 }
 0x312   :  { %v907_v33 = vmul.f32 %v890_v25, %v879_v28  ;;  %v871_v34 = vadd.f32 %v870_v32, %v774_v22 }
 0x313   :  { %v882_v36 = vmax.f32 %v876_v31, 0.0 }
 0x314   :  { %v911_v35 = vadd.f32 %v908_v30, %v907_v33  ;;  %v881_v37 = vmax.f32 %v871_v34, 0.0 }
 0x315   :  { %v910_v41 = vmul.f32 %v905_v40, %v882_v36 }
 0x316   :  { %v909_v39 = vmul.f32 %v900_v38, %v881_v37 }
 0x318   :  { %v912_v42 = vadd.f32 %v911_v35, %v909_v39 }
 0x31a   :  { %v913_v43 = vadd.f32 %v912_v42, %v910_v41 }
 0x31c   :  { %v914_v44 = vrot.slane %v913_v43, 4 }
 0x31e   :  { %v915_v45 = vadd.f32 %v914_v44, %v913_v43 }
 0x320   :  { %v916_v46 = vrot.slane %v915_v45, 2 }
 0x322   :  { %v917_v47 = vadd.f32 %v916_v46, %v915_v45 }
 0x324   :  { %v918_v48 = vrot.slane %v917_v47, 1 }
 0x326   :  { %v919_v49 = vadd.f32 %v918_v48, %v917_v47 }
 0x328   :  { %v921_v51 = vadd.f32 %v920_v13, %v919_v49 }
 0x32a   :  { %v924_v52 = vadd.f32 %v923_v50, %v921_v51 }
 0x32c   :  { %v925_v53 = vand.u32 2147483647, %v924_v52  ;;  %vm929_vm2 = vcmp.ge.f32.partialorder %v924_v52, 0.0 }
 0x32e   :  { %v926_v54 = vsub.f32 0.0, %v925_v53 }
 0x330   :  { %v927_v55 = vmul.f32 1.442695, %v926_v54 }
 0x332   :  { %1197 = vpow2.f32 %v927_v55 }
 0x33c   :  { %v1198_v56 = vpop.eup %1197 }
 0x33d   :  { %v930_v57 = vadd.f32 1.0, %v1198_v56 }
 0x33f   :  { %1199 = vrcp.f32 %v930_v57 }
 0x349   :  { %v1200_v58 = vpop.eup %1199 }
 0x34a   :  { %v933_v59 = vmul.f32 %v1200_v58, %v1198_v56 }
 0x34c   :  { %v934_v60 = vsel %vm929_vm2, %v1200_v58, %v933_v59 }
 0x34d   :  { %935 = vst [vmem:[#allocation3] sm:$0x1] %v934_v60 }
 0x34e   :  { %1212 = shalt.err (!%p1209_p4)
}
 0x34f   :  { %s1213_s21 = scalar_lea.hbm %s1645_s9, 16 }
 0x350   :  { %p1214_p5 = scmp.ne.s32.totalorder %s1645_s9, %s1213_s21  ;;  %p1217_p6 = scmp.lt.u32.totalorder %s1213_s21, %s1645_s9 }
 0x352   :  { %p1219_p7 = pnand %p1217_p6, %p1214_p5 }
 0x354   :  { %1222 = shalt.err (!%p1219_p7)
}
 0x355   :  { %945 = dma.vmem_to_hbm [thread:$0]  %s943_s18, 16, %s1645_s9, [#allocation4]  }
 0x356   :  { %1223 = dma.done.wait [#allocation4], 16  }
 0x357   :  { %1224 = vsyncadd [#allocation4], 4294967280 }
 0x358   :  { %949 = vsyncpa [#allocation4], 1 }

</bundles_post_ra>
